<compile_context>
chip_gen: v7x
topology: tpu7x:2x2x1
jax: 0.10.0
libtpu: 0.0.40
codegen_flags: <defaults>
</compile_context>

<pallas_src>
import functools

import numpy as np
import jax
import jax.numpy as jnp
from jax import lax
from jax.experimental import pallas as pl
from jax.experimental.pallas import tpu as pltpu

KSIZE = 5      # conv kernel size
POOL = 3       # max_pool2d kernel_size == stride (PyTorch default stride=kernel_size)
CO = 6         # all three convs have 6 output channels
CG = 3         # output channels per grid step (channel group)
NG = CO // CG  # channel groups -> second "parallel" grid axis


# ----------------------------------------------------------------------------
# pltpu.roll direction probe (tiny one-off kernel): returns s in {+1, -1} such
# that pltpu.roll(x, (s*k) % N, axis=-1)[..., i] == x[..., i + k]  ("shift left").
# Keeps correctness independent of the roll sign convention.
# ----------------------------------------------------------------------------
_ROLL_LEFT_SIGN = None


def _get_roll_left_sign():
    global _ROLL_LEFT_SIGN
    if _ROLL_LEFT_SIGN is None:
        def probe(x_ref, o_ref):
            o_ref[...] = pltpu.roll(x_ref[...], 1, axis=1)

        x = jnp.tile(jnp.arange(128, dtype=jnp.float32)[None, :], (8, 1))
        y = pl.pallas_call(
            probe, out_shape=jax.ShapeDtypeStruct((8, 128), jnp.float32))(x)
        y00 = float(np.asarray(jax.device_get(y))[0, 0])
        _ROLL_LEFT_SIGN = 1 if y00 == 1.0 else -1
    return _ROLL_LEFT_SIGN


def _pick_rp(Hp, Wpad, max_acc_vregs=10):
    """Largest divisor of Hp whose (3*RP, Wpad) f32 accumulator uses <= max_acc_vregs."""
    lanegroups = (Wpad + 127) // 128
    best = 1
    for d in range(1, Hp + 1):
        if Hp % d == 0 and (-(-(POOL * d) // 8)) * lanegroups <= max_acc_vregs:
            best = d
    return best


# ----------------------------------------------------------------------------
# Fused Conv2d(valid, k=5) + bias + ReLU + MaxPool2d(k=3, s=3) kernel.
# Grid = (image, channel-group).  Row pooling is done in-kernel; the stride-3
# column decimation is done by the wrapper (exact strided slice on the output).
# ----------------------------------------------------------------------------
def _conv_relu_pool_kernel(x_ref, w_ref, b_ref, out_ref, *, Ci, Hp, Wpad, RP, left):
    """
    x_ref  : (Ci, Hi, Wpad)   VMEM  input feature map (one image, W zero-padded)
    w_ref  : (CO*Ci*25,)      SMEM  conv weights flattened in (co, ci, kh, kw) order
    b_ref  : (CO,)            SMEM  conv bias
    out_ref: (CG, Hp, Wpad)   VMEM  ReLU + 3x3-window max, columns not yet decimated
    """
    RC = POOL * RP                 # conv rows computed per strip
    n_strips = Hp // RP
    g0 = pl.program_id(1) * CG     # first output channel of this group

    def lshift(v, k):              # lane shift-left by k: out[..., i] = v[..., i + k]
        return pltpu.roll(v, (left * k) % Wpad, axis=1)

    def strip(s, carry):
        p0 = s * RP                # first pooled output row of this strip
        r0 = s * RC                # first conv output row (== first input row used)

        # Per-channel strip accumulators (bias folded into the init); they stay in
        # vregs for the whole strip.
        accs = [jnp.full((RC, Wpad), b_ref[g0 + c], dtype=jnp.float32)
                for c in range(CG)]
        for ci in range(Ci):
            for kh in range(KSIZE):                        # static unroll
                xs = x_ref[ci, pl.ds(r0 + kh, RC), :]      # (RC, Wpad): one load, shared
                for kw in range(KSIZE):                    # static unroll
                    if kw:
                        xs = lshift(xs, 1)                 # cumulative lane shift (XLU)
                    for c in range(CG):                    # shared across the group
                        w = w_ref[(((g0 + c) * Ci + ci) * KSIZE + kh) * KSIZE + kw]
                        accs[c] = accs[c] + xs * w

        # Pooling epilogue: 3-wide column-window max via two lane rolls, then the
        # 3-row max + ReLU per pooled row, written straight to the output block.
        # Wrapped lanes / conv columns >= Wo never reach the columns the wrapper
        # keeps (0, 3, ..., 3*(Wp-1)), so no masking is needed.
        for c in range(CG):
            a = accs[c]
            cmax = jnp.maximum(jnp.maximum(a, lshift(a, 1)), lshift(a, 2))
            for p in range(RP):
                r = POOL * p
                row = jnp.maximum(
                    jnp.maximum(cmax[r:r + 1, :], cmax[r + 1:r + 2, :]),
                    cmax[r + 2:r + 3, :])
                out_ref[c, pl.ds(p0 + p, 1), :] = jnp.maximum(row, 0.0)
        return carry

    lax.fori_loop(0, n_strips, strip, 0)


def conv_relu_pool(x, w, b, *, rp=None):
    """x: (B, Ci, Hi, Wi) f32; w: (CO, Ci, 5, 5); b: (CO,)  ->  (B, CO, Hp, Wp)."""
    B, Ci, Hi, Wi = x.shape
    assert w.shape == (CO, Ci, KSIZE, KSIZE) and b.shape == (CO,)
    Ho, Wo = Hi - KSIZE + 1, Wi - KSIZE + 1        # valid conv output
    Hp, Wp = Ho // POOL, Wo // POOL                # pooled size (floor mode)

    # pad W to a lane multiple so every in-kernel value is lane-group aligned
    Wpad = ((Wi + 127) // 128) * 128
    if Wpad != Wi:
        x = jnp.pad(x, ((0, 0), (0, 0), (0, 0), (0, Wpad - Wi)))

    if rp is None:
        rp = _pick_rp(Hp, Wpad)
    assert Hp % rp == 0

    kernel = functools.partial(
        _conv_relu_pool_kernel, Ci=Ci, Hp=Hp, Wpad=Wpad,
        RP=rp, left=_get_roll_left_sign())

    y = pl.pallas_call(
        kernel,
        out_shape=jax.ShapeDtypeStruct((B, CO, Hp, Wpad), jnp.float32),
        grid=(B, NG),
        in_specs=[
            pl.BlockSpec((None, Ci, Hi, Wpad), lambda bi, gi: (bi, 0, 0, 0)),
            pl.BlockSpec(memory_space=pltpu.MemorySpace.SMEM),   # conv weights (scalars)
            pl.BlockSpec(memory_space=pltpu.MemorySpace.SMEM),   # conv bias
        ],
        out_specs=pl.BlockSpec((None, CG, Hp, Wpad), lambda bi, gi: (bi, gi, 0, 0)),
        compiler_params=pltpu.CompilerParams(
            dimension_semantics=("parallel", "parallel"),  # image x channel-group
            vmem_limit_bytes=32 * 1024 * 1024,             # fits v7x's 64 MiB VMEM
        ),
    )(x, w.reshape(-1), b)

    # Exact stride-3 column decimation (plain XLA strided slice on the HBM result;
    # the kernel is VALU-bound, so the extra writeback hides under compute).
    return y[:, :, :, 0:POOL * Wp:POOL]


# ----------------------------------------------------------------------------
# MLP head kernel: linear1+ReLU -> linear2+ReLU -> linear3
# (weights stored (in, out), biases stored (1, out): no per-call transpose)
# ----------------------------------------------------------------------------
def _mlp_kernel(x_ref, w1_ref, b1_ref, w2_ref, b2_ref, w3_ref, b3_ref, o_ref):
    hi = lax.Precision.HIGHEST
    h = lax.dot(x_ref[...], w1_ref[...], precision=hi,
                preferred_element_type=jnp.float32) + b1_ref[...]
    h = jnp.maximum(h, 0.0)
    h = lax.dot(h, w2_ref[...], precision=hi,
                preferred_element_type=jnp.float32) + b2_ref[...]
    h = jnp.maximum(h, 0.0)
    o_ref[...] = lax.dot(h, w3_ref[...], precision=hi,
                         preferred_element_type=jnp.float32) + b3_ref[...]


def mlp(x, params):
    B = x.shape[0]
    A = params["lin3_w"].shape[1]
    return pl.pallas_call(
        _mlp_kernel,
        out_shape=jax.ShapeDtypeStruct((B, A), jnp.float32),
    )(x,
      params["lin1_w"], params["lin1_b"],
      params["lin2_w"], params["lin2_b"],
      params["lin3_w"], params["lin3_b"])


# ----------------------------------------------------------------------------
# Full forward
# ----------------------------------------------------------------------------
def network_forward(x_nhwc, params):
    # mirrors x.permute((0, 3, 1, 2))
    x = jnp.transpose(x_nhwc, (0, 3, 1, 2)).astype(jnp.float32)
    x = conv_relu_pool(x, params["conv1_w"], params["conv1_b"])
    x = conv_relu_pool(x, params["conv2_w"], params["conv2_b"])
    x = conv_relu_pool(x, params["conv3_w"], params["conv3_b"])
    B = x.shape[0]
    x = x.reshape(B, -1)                              # NCHW flatten == nn.Flatten()
    assert x.shape[1] == params["lin1_w"].shape[0]    # 2268 == linear1.in_features
    return mlp(x, params)


# Pure-JAX reference of the same forward pass (numerical sanity check).
def network_forward_reference(x_nhwc, params):
    hi = lax.Precision.HIGHEST
    x = jnp.transpose(x_nhwc, (0, 3, 1, 2)).astype(jnp.float32)

    def stage(x, w, b):
        y = lax.conv_general_dilated(x, w, (1, 1), "VALID",
                                     dimension_numbers=("NCHW", "OIHW", "NCHW"),
                                     precision=hi) + b[None, :, None, None]
        y = jnp.maximum(y, 0.0)
        return lax.reduce_window(y, -jnp.inf, lax.max,
                                 (1, 1, POOL, POOL), (1, 1, POOL, POOL), "VALID")

    x = stage(x, params["conv1_w"], params["conv1_b"])
    x = stage(x, params["conv2_w"], params["conv2_b"])
    x = stage(x, params["conv3_w"], params["conv3_b"])
    x = x.reshape(x.shape[0], -1)
    h = jnp.maximum(jnp.dot(x, params["lin1_w"], precision=hi) + params["lin1_b"], 0.0)
    h = jnp.maximum(jnp.dot(h, params["lin2_w"], precision=hi) + params["lin2_b"], 0.0)
    return jnp.dot(h, params["lin3_w"], precision=hi) + params["lin3_b"]


def init_params(key, action_space):
    # deterministic, PyTorch-default-style uniform(-1/sqrt(fan_in), 1/sqrt(fan_in))
    ks = jax.random.split(key, 12)

    def u(k, shape, fan_in):
        bound = 1.0 / float(np.sqrt(fan_in))
        return jax.random.uniform(k, shape, jnp.float32, -bound, bound)

    return {
        "conv1_w": u(ks[0], (CO, 3, KSIZE, KSIZE), 3 * KSIZE * KSIZE),
        "conv1_b": u(ks[1], (CO,), 3 * KSIZE * KSIZE),
        "conv2_w": u(ks[2], (CO, CO, KSIZE, KSIZE), CO * KSIZE * KSIZE),
        "conv2_b": u(ks[3], (CO,), CO * KSIZE * KSIZE),
        "conv3_w": u(ks[4], (CO, CO, KSIZE, KSIZE), CO * KSIZE * KSIZE),
        "conv3_b": u(ks[5], (CO,), CO * KSIZE * KSIZE),
        # Linear weights stored (in, out), biases (1, out): y = x @ W + b
        "lin1_w": u(ks[6], (2268, 128), 2268),
        "lin1_b": u(ks[7], (1, 128), 2268),
        "lin2_w": u(ks[8], (128, 128), 128),
        "lin2_b": u(ks[9], (1, 128), 128),
        "lin3_w": u(ks[10], (128, action_space), 128),
        "lin3_b": u(ks[11], (1, action_space), 128),
    }


if __name__ == "__main__":
    B = 2
    H, W, C = 560, 640, 3     # observation size implied by linear1.in_features == 2268
    ACTION_SPACE = 6          # gym Atari Pong: env.action_space.n == 6

    _get_roll_left_sign()     # one-time roll-direction probe (outside jit tracing)

    root = jax.random.PRNGKey(0)
    k_x, k_p = jax.random.split(root)
    x = jax.random.uniform(k_x, (B, H, W, C), jnp.float32)
    params = init_params(k_p, ACTION_SPACE)

    out = jax.block_until_ready(jax.jit(network_forward)(x, params))
    assert out.shape == (B, ACTION_SPACE) and out.dtype == jnp.float32

    # sanity check against a pure-JAX/XLA reference of the same forward pass
    ref = jax.block_until_ready(jax.jit(network_forward_reference)(x, params))
    np.testing.assert_allclose(np.asarray(out), np.asarray(ref), rtol=1e-3, atol=1e-3)

    print("KERNEL_OK")
</pallas_src>

<mosaic_0001>
module attributes {stable_mosaic.version = 11 : i64} {
  func.func @probe(%arg0: memref<8x128xf32, #tpu.memory_space<vmem>>, %arg1: memref<8x128xf32, #tpu.memory_space<vmem>>) attributes {dimension_semantics = [], scalar_prefetch = 0 : i64, scratch_operands = 0 : i64, tpu.core_type = #tpu.core_type<tc>} {
    %c0 = arith.constant 0 : index
    %c0_0 = arith.constant 0 : index
    %0 = vector.load %arg0[%c0, %c0_0] : memref<8x128xf32, #tpu.memory_space<vmem>>, vector<8x128xf32>
    %c1_i32 = arith.constant 1 : i32
    %1 = tpu.dynamic_rotate %0 by %c1_i32 dim 1 : vector<8x128xf32>, i32 -> vector<8x128xf32>
    %c0_1 = arith.constant 0 : index
    %c0_2 = arith.constant 0 : index
    %2 = vector.load %arg1[%c0_1, %c0_2] : memref<8x128xf32, #tpu.memory_space<vmem>>, vector<8x128xf32>
    tpu.vector_store %arg1[%c0_1, %c0_2], %1 {strides = array<i32>} : memref<8x128xf32, #tpu.memory_space<vmem>>, vector<8x128xf32>,
    return
  }
}

</mosaic_0001>

<bundles_post_ra>
// kernel: tpu_custom_call.1
= control target key start
LH: loop header
LB: loop body
LE: loop exit
PB: predicated region body
PF: predicated region fallthrough
CT: control target
= control target key end

     0   :  { %6 = vsyncpa [#allocation3], 0  ;;  %s128_s0 = inlined_call_operand.hbm [shape: f32[8,128], index: 0, kind: input, shape index: {}]   ;;  %s129_s1 = inlined_call_operand.hbm [shape: f32[8,128], index: 1, kind: output, shape index: {}]  }
   0x1   :  { %7 = vsyncpa [#allocation4], 0  ;;  %s91_s6 = smov [#allocation2]   ;;  %s43_s10 = scalar_lea.hbm %s128_s0, 128 }
   0x2   :  { %s14_s7 = sshll.u32 %s91_s6, 4  ;;  %p44_p0 = scmp.ne.s32.totalorder %s128_s0, %s43_s10  ;;  %s15_s7 = int_to_ptr.vmem [resolvable:$true] %s14_s7 }
   0x3   :  { %p47_p1 = scmp.lt.u32.totalorder %s43_s10, %s128_s0 }
   0x5   :  { %p49_p2 = pnand %p47_p1, %p44_p0 }
   0x7   :  { %52 = shalt.err (!%p49_p2)
}
   0x8   :  { %s53_s15 = scalar_lea.vmem %s15_s7, 128  ;;  %p58_p4 = scmp.lt.s32.totalorder %s15_s7, %s15_s7 }
   0x9   :  { %p54_p3 = scmp.ne.s32.totalorder %s15_s7, %s53_s15  ;;  %p59_p5 = scmp.lt.s32.totalorder %s53_s15, %s53_s15 }
   0xb   :  { %p60_p6 = por %p59_p5, %p58_p4 }
   0xd   :  { %p61_p7 = pnand %p60_p6, %p54_p3 }
   0xf   :  { %64 = shalt.err (!%p61_p7)
}
  0x10   :  { %17 = dma.hbm_to_vmem [thread:$0]  %s128_s0, 128, %s15_s7, [#allocation3]  }
  0x11   :  { %87 = dma.done.wait [#allocation3], 128  }
  0x12   :  { %88 = vsyncadd [#allocation3], 4294967168  ;;  %v21_v0 = vld [vmem:[#allocation2] sm:$0xff]  ;;  %s92_s18 = smov 1   ;;  %s93_s19 = smov [#allocation5]  }
  0x13   :  { %22 = vrot.lane.b32.xlu0 %v21_v0, %s92_s18  ;;  %s31_s20 = sshll.u32 %s93_s19, 4  ;;  %s32_s20 = int_to_ptr.vmem [resolvable:$true] %s31_s20 }
  0x14   :  { %s65_s21 = scalar_lea.vmem %s32_s20, 128  ;;  %p70_p9 = scmp.lt.s32.totalorder %s32_s20, %s32_s20 }
  0x15   :  { %p66_p8 = scmp.ne.s32.totalorder %s32_s20, %s65_s21  ;;  %p71_p10 = scmp.lt.s32.totalorder %s65_s21, %s65_s21 }
  0x17   :  { %p72_p11 = por %p71_p10, %p70_p9 }
  0x19   :  { %p73_p12 = pnand %p72_p11, %p66_p8 }
  0x85   :  { %v23_v1 = vpop.permute.xlu0 %22 }
  0x86   :  { %24 = vst [vmem:[#allocation5] sm:$0xff] %v23_v1 }
  0x87   :  { %76 = shalt.err (!%p73_p12)
}
  0x88   :  { %s77_s0 = scalar_lea.hbm %s129_s1, 128 }
  0x89   :  { %p78_p13 = scmp.ne.s32.totalorder %s129_s1, %s77_s0  ;;  %p81_p0 = scmp.lt.u32.totalorder %s77_s0, %s129_s1 }
  0x8b   :  { %p83_p1 = pnand %p81_p0, %p78_p13 }
  0x8d   :  { %86 = shalt.err (!%p83_p1)
}
  0x8e   :  { %34 = dma.vmem_to_hbm [thread:$0]  %s32_s20, 128, %s129_s1, [#allocation4]  }
  0x8f   :  { %89 = dma.done.wait [#allocation4], 128  }
  0x90   :  { %90 = vsyncadd [#allocation4], 4294967168 }
  0x91   :  { %38 = vsyncpa [#allocation3], 1 }
  0x92   :  { %39 = vsyncpa [#allocation4], 1 }

</bundles_post_ra>
